<compile_context>
chip_gen: v7x
topology: tpu7x:2x2x1
jax: 0.10.0
libtpu: 0.0.40
codegen_flags: <defaults>
</compile_context>

<pallas_src>
import jax
import jax.numpy as jnp
import numpy as np
from jax.experimental import pallas as pl
from jax.experimental.pallas import tpu as pltpu

LANES = 128


def _round_up(x, m):
    return ((x + m - 1) // m) * m


# ---------------------------------------------------------------------------
# Kernel: per-image masked-MSE partial sums (per-lane accumulators)
# ---------------------------------------------------------------------------
def mse_kernel(pred_ref, targ_ref, mask_ref, loss_ref, msum_ref):
    # pred/targ/mask blocks: (1, tile_rows, 128)
    # loss/msum blocks     : (1, 1, 128)  -- resident across the row-tile axis
    t = pl.program_id(1)

    @pl.when(t == 0)
    def _():
        loss_ref[...] = jnp.zeros_like(loss_ref)
        msum_ref[...] = jnp.zeros_like(msum_ref)

    p = pred_ref[...].astype(jnp.float32)
    tg = targ_ref[...].astype(jnp.float32)
    m = mask_ref[...].astype(jnp.float32)

    r = p - tg
    loss_ref[...] += jnp.sum(m * r * r, axis=1, keepdims=True)  # (1, 1, 128)
    msum_ref[...] += jnp.sum(m, axis=1, keepdims=True)          # (1, 1, 128)


# ---------------------------------------------------------------------------
# Wrapper
# ---------------------------------------------------------------------------
def midas_mse_loss(prediction, target, mask, *, reduction="batch-based",
                   tile_rows=512):
    B = prediction.shape[0]
    N = int(np.prod(prediction.shape[1:]))

    rows = -(-N // LANES)                                # ceil div
    tile_rows = max(8, min(int(tile_rows), _round_up(rows, 8)))
    tile_rows = _round_up(tile_rows, 8)
    rows_pad = _round_up(rows, tile_rows)
    n_tiles = rows_pad // tile_rows
    Np = rows_pad * LANES

    if mask.dtype == jnp.bool_:
        mask = mask.astype(prediction.dtype)

    def prep(x):
        x = x.reshape(B, N)
        if Np > N:
            x = jnp.pad(x, ((0, 0), (0, Np - N)))        # zero pad: contributes 0
        return x.reshape(B, rows_pad, LANES)

    p3, t3, m3 = prep(prediction), prep(target), prep(mask)

    in_spec = pl.BlockSpec((1, tile_rows, LANES), lambda b, t: (b, t, 0))
    out_spec = pl.BlockSpec((1, 1, LANES), lambda b, t: (b, 0, 0))

    loss_lanes, mask_lanes = pl.pallas_call(
        mse_kernel,
        out_shape=(jax.ShapeDtypeStruct((B, 1, LANES), jnp.float32),
                   jax.ShapeDtypeStruct((B, 1, LANES), jnp.float32)),
        grid=(B, n_tiles),
        in_specs=[in_spec, in_spec, in_spec],
        out_specs=(out_spec, out_spec),
        compiler_params=pltpu.CompilerParams(
            dimension_semantics=("parallel", "arbitrary")),
    )(p3, t3, m3)

    image_loss = jnp.sum(loss_lanes, axis=(1, 2))        # (B,)  sum(mask*res^2,(1,2))
    M = jnp.sum(mask_lanes, axis=(1, 2))                 # (B,)  sum(mask,(1,2))

    if reduction == "batch-based":
        divisor = 2.0 * jnp.sum(M)
        return jnp.where(divisor == 0, jnp.float32(0.0),
                         jnp.sum(image_loss) / divisor)
    else:  # image-based: image_loss[valid] /= (2*M)[valid]; mean over images
        M2 = 2.0 * M
        per_img = jnp.where(M2 != 0,
                            image_loss / jnp.where(M2 != 0, M2, 1.0),
                            image_loss)
        return jnp.mean(per_img)


# ---------------------------------------------------------------------------
# Pure-JAX reference (mirrors the PyTorch forward, batch-based reduction)
# ---------------------------------------------------------------------------
def reference_loss(prediction, target, mask):
    M = jnp.sum(mask, axis=(1, 2))
    res = prediction - target
    image_loss = jnp.sum(mask * res * res, axis=(1, 2))
    divisor = jnp.sum(2.0 * M)
    return jnp.where(divisor == 0, jnp.float32(0.0),
                     jnp.sum(image_loss) / divisor)


if __name__ == "__main__":
    key = jax.random.PRNGKey(0)
    k1, k2, k3 = jax.random.split(key, 3)

    B, H, W = 2, 48, 96                                   # small (B, H, W) depth maps
    pred = jax.random.uniform(k1, (B, H, W), dtype=jnp.float32)
    target = jax.random.uniform(k2, (B, H, W), dtype=jnp.float32)
    mask = jax.random.bernoulli(k3, 0.7, (B, H, W)).astype(jnp.float32)

    ref = jax.block_until_ready(reference_loss(pred, target, mask))

    # single-tile path (default tile size)
    loss = jax.block_until_ready(midas_mse_loss(pred, target, mask))
    np.testing.assert_allclose(np.asarray(loss), np.asarray(ref),
                               rtol=2e-5, atol=1e-6)

    # multi-tile path (forces the accumulate-across-row-tiles init/add logic)
    loss2 = jax.block_until_ready(midas_mse_loss(pred, target, mask, tile_rows=8))
    np.testing.assert_allclose(np.asarray(loss2), np.asarray(ref),
                               rtol=2e-5, atol=1e-6)

    # all-invalid mask -> divisor == 0 -> loss == 0 (matches the torch branch)
    zero = jax.block_until_ready(
        midas_mse_loss(pred, target, jnp.zeros_like(mask)))
    np.testing.assert_allclose(np.asarray(zero), 0.0)

    print("KERNEL_OK")
</pallas_src>

<mosaic_0001>
module attributes {stable_mosaic.version = 11 : i64} {
  func.func @mse_kernel(%arg0: i32, %arg1: i32, %arg2: memref<1x40x128xf32, #tpu.memory_space<vmem>>, %arg3: memref<1x40x128xf32, #tpu.memory_space<vmem>>, %arg4: memref<1x40x128xf32, #tpu.memory_space<vmem>>, %arg5: memref<1x1x128xf32, #tpu.memory_space<vmem>>, %arg6: memref<1x1x128xf32, #tpu.memory_space<vmem>>) attributes {dimension_semantics = [#tpu.dimension_semantics<parallel>, #tpu.dimension_semantics<arbitrary>], iteration_bounds = array<i64: 2, 1>, scalar_prefetch = 0 : i64, scratch_operands = 0 : i64, tpu.core_type = #tpu.core_type<tc>, window_params = [{transform_indices = @transform_0, window_bounds = array<i64: 1, 40, 128>}, {transform_indices = @transform_1, window_bounds = array<i64: 1, 40, 128>}, {transform_indices = @transform_2, window_bounds = array<i64: 1, 40, 128>}, {transform_indices = @transform_3, window_bounds = array<i64: 1, 1, 128>}, {transform_indices = @transform_4, window_bounds = array<i64: 1, 1, 128>}]} {
    %c0_i32 = arith.constant 0 : i32
    %0 = arith.cmpi eq, %arg1, %c0_i32 : i32
    %1 = arith.extui %0 : i1 to i32
    %c0_i32_0 = arith.constant 0 : i32
    %2 = arith.cmpi ne, %1, %c0_i32_0 : i32
    scf.if %2 {
      %cst_22 = arith.constant 0.000000e+00 : f32
      %19 = vector.broadcast %cst_22 : f32 to vector<1x1x128xf32>
      %c0_23 = arith.constant 0 : index
      %c0_24 = arith.constant 0 : index
      %c0_25 = arith.constant 0 : index
      %20 = vector.load %arg5[%c0_23, %c0_24, %c0_25] : memref<1x1x128xf32, #tpu.memory_space<vmem>>, vector<1x1x128xf32>
      tpu.vector_store %arg5[%c0_23, %c0_24, %c0_25], %19 {strides = array<i32>} : memref<1x1x128xf32, #tpu.memory_space<vmem>>, vector<1x1x128xf32>,
      %cst_26 = arith.constant 0.000000e+00 : f32
      %21 = vector.broadcast %cst_26 : f32 to vector<1x1x128xf32>
      %c0_27 = arith.constant 0 : index
      %c0_28 = arith.constant 0 : index
      %c0_29 = arith.constant 0 : index
      %22 = vector.load %arg6[%c0_27, %c0_28, %c0_29] : memref<1x1x128xf32, #tpu.memory_space<vmem>>, vector<1x1x128xf32>
      tpu.vector_store %arg6[%c0_27, %c0_28, %c0_29], %21 {strides = array<i32>} : memref<1x1x128xf32, #tpu.memory_space<vmem>>, vector<1x1x128xf32>,
    } else {
    }
    %c0 = arith.constant 0 : index
    %c0_1 = arith.constant 0 : index
    %c0_2 = arith.constant 0 : index
    %3 = vector.load %arg2[%c0, %c0_1, %c0_2] : memref<1x40x128xf32, #tpu.memory_space<vmem>>, vector<1x40x128xf32>
    %c0_3 = arith.constant 0 : index
    %c0_4 = arith.constant 0 : index
    %c0_5 = arith.constant 0 : index
    %4 = vector.load %arg3[%c0_3, %c0_4, %c0_5] : memref<1x40x128xf32, #tpu.memory_space<vmem>>, vector<1x40x128xf32>
    %c0_6 = arith.constant 0 : index
    %c0_7 = arith.constant 0 : index
    %c0_8 = arith.constant 0 : index
    %5 = vector.load %arg4[%c0_6, %c0_7, %c0_8] : memref<1x40x128xf32, #tpu.memory_space<vmem>>, vector<1x40x128xf32>
    %6 = arith.subf %3, %4 : vector<1x40x128xf32>
    %c0_9 = arith.constant 0 : index
    %c0_10 = arith.constant 0 : index
    %c0_11 = arith.constant 0 : index
    %7 = vector.load %arg5[%c0_9, %c0_10, %c0_11] : memref<1x1x128xf32, #tpu.memory_space<vmem>>, vector<1x1x128xf32>
    %8 = arith.mulf %5, %6 : vector<1x40x128xf32>
    %9 = arith.mulf %8, %6 : vector<1x40x128xf32>
    %cst = arith.constant dense<0.000000e+00> : vector<1x128xf32>
    %10 = vector.multi_reduction <add>, %9, %cst [1] : vector<1x40x128xf32> to vector<1x128xf32>
    %11 = vector.shape_cast %10 : vector<1x128xf32> to vector<1x1x128xf32>
    %12 = arith.addf %7, %11 : vector<1x1x128xf32>
    %c0_12 = arith.constant 0 : index
    %c0_13 = arith.constant 0 : index
    %c0_14 = arith.constant 0 : index
    %13 = vector.load %arg5[%c0_12, %c0_13, %c0_14] : memref<1x1x128xf32, #tpu.memory_space<vmem>>, vector<1x1x128xf32>
    tpu.vector_store %arg5[%c0_12, %c0_13, %c0_14], %12 {strides = array<i32>} : memref<1x1x128xf32, #tpu.memory_space<vmem>>, vector<1x1x128xf32>,
    %c0_15 = arith.constant 0 : index
    %c0_16 = arith.constant 0 : index
    %c0_17 = arith.constant 0 : index
    %14 = vector.load %arg6[%c0_15, %c0_16, %c0_17] : memref<1x1x128xf32, #tpu.memory_space<vmem>>, vector<1x1x128xf32>
    %cst_18 = arith.constant dense<0.000000e+00> : vector<1x128xf32>
    %15 = vector.multi_reduction <add>, %5, %cst_18 [1] : vector<1x40x128xf32> to vector<1x128xf32>
    %16 = vector.shape_cast %15 : vector<1x128xf32> to vector<1x1x128xf32>
    %17 = arith.addf %14, %16 : vector<1x1x128xf32>
    %c0_19 = arith.constant 0 : index
    %c0_20 = arith.constant 0 : index
    %c0_21 = arith.constant 0 : index
    %18 = vector.load %arg6[%c0_19, %c0_20, %c0_21] : memref<1x1x128xf32, #tpu.memory_space<vmem>>, vector<1x1x128xf32>
    tpu.vector_store %arg6[%c0_19, %c0_20, %c0_21], %17 {strides = array<i32>} : memref<1x1x128xf32, #tpu.memory_space<vmem>>, vector<1x1x128xf32>,
    return
  }
  func.func @transform_0(%arg0: i32, %arg1: i32) -> (i32, i32, i32) {
    %c0_i32 = arith.constant 0 : i32
    %c0_i32_0 = arith.constant 0 : i32
    return %arg0, %arg1, %c0_i32 : i32, i32, i32
  }
  func.func @transform_1(%arg0: i32, %arg1: i32) -> (i32, i32, i32) {
    %c0_i32 = arith.constant 0 : i32
    %c0_i32_0 = arith.constant 0 : i32
    return %arg0, %arg1, %c0_i32 : i32, i32, i32
  }
  func.func @transform_2(%arg0: i32, %arg1: i32) -> (i32, i32, i32) {
    %c0_i32 = arith.constant 0 : i32
    %c0_i32_0 = arith.constant 0 : i32
    return %arg0, %arg1, %c0_i32 : i32, i32, i32
  }
  func.func @transform_3(%arg0: i32, %arg1: i32) -> (i32, i32, i32) {
    %c0_i32 = arith.constant 0 : i32
    %c0_i32_0 = arith.constant 0 : i32
    %c0_i32_1 = arith.constant 0 : i32
    return %arg0, %c0_i32, %c0_i32_0 : i32, i32, i32
  }
  func.func @transform_4(%arg0: i32, %arg1: i32) -> (i32, i32, i32) {
    %c0_i32 = arith.constant 0 : i32
    %c0_i32_0 = arith.constant 0 : i32
    %c0_i32_1 = arith.constant 0 : i32
    return %arg0, %c0_i32, %c0_i32_0 : i32, i32, i32
  }
}

</mosaic_0001>

<bundles_post_ra>
// kernel: tpu_custom_call.1
= control target key start
LH: loop header
LB: loop body
LE: loop exit
PB: predicated region body
PF: predicated region fallthrough
CT: control target
= control target key end

     0   :  { %s1242_s0 = inlined_call_operand.hbm [shape: f32[2,40,128], index: 0, kind: input, shape index: {}]   ;;  %s1243_s1 = inlined_call_operand.hbm [shape: f32[2,40,128], index: 1, kind: input, shape index: {}]   ;;  %s1244_s2 = inlined_call_operand.hbm [shape: f32[2,40,128], index: 2, kind: input, shape index: {}]   ;;  %s1245_s3 = inlined_call_operand.hbm [shape: f32[2,1,128], index: 3, kind: output, shape index: {0}]   ;;  %s1246_s4 = inlined_call_operand.hbm [shape: f32[2,1,128], index: 4, kind: output, shape index: {1}]  }
   0x1   :  { %1258 = sst [smem:[#allocation19_spill]] %s1243_s1 }
   0x2   :  { %10 = vsyncpa [#allocation3], 0 }
   0x3   :  { %12 = vsyncpa [#allocation3 + $0x1], 0 }
   0x4   :  { %13 = vsyncpa [#allocation6], 0 }
   0x5   :  { %15 = vsyncpa [#allocation6 + $0x1], 0 }
   0x6   :  { %16 = vsyncpa [#allocation4], 0 }
   0x7   :  { %18 = vsyncpa [#allocation4 + $0x1], 0 }
   0x8   :  { %19 = vsyncpa [#allocation10], 0 }
   0x9   :  { %21 = vsyncpa [#allocation10 + $0x1], 0  ;;  %s917_s15 = smov 0   ;;  %s919_s16 = smov 0  }
   0xa   :  { %s921_s17 = smov 0   ;;  %s923_s18 = smov 0  }
   0xb   :  { %s925_s19 = smov 0   ;;  %s927_s20 = smov 0  }
   0xc LB: > { %1259 = sst [smem:[#allocation15_spill]] %s878_s19  ;;  %s948_s21 = sadd.s32 4294967295, %s882_s20   ;;  %s882_s20 = sphi %s927_s20, %s27_s20   ;;  %s878_s19 = sphi %s925_s19, %s1284_s19   ;;  %s874_s18 = sphi %s923_s18, %s1283_s18   ;;  %s870_s17 = sphi %s921_s17, %s1287_s17   ;;  %s866_s16 = sphi %s919_s16, %s1286_s16   ;;  %s862_s15 = sphi %s917_s15, %s1285_s15  }
   0xd   : > { %1260 = sst [smem:[#allocation16_spill]] %s882_s20  ;;  %s576_s22 = sadd.s32 4294967294, %s882_s20  }
   0xe   : > { %s39_s23 = sadd.s32 1, %s878_s19  ;;  %s48_s24 = sadd.s32 1, %s870_s17 }
   0xf   : > { %p41_p0 = scmp.ge.s32.totalorder %s39_s23, 2  ;;  %p55_p1 = scmp.ne.s32.totalorder %s870_s17, %s866_s16 }
  0x10   : > { %p56_p2 = scmp.eq.s32.totalorder %s882_s20, 0  ;;  %p61_p3 = scmp.ne.s32.totalorder %s866_s16, %s862_s15 }
  0x11   : > { %s1289_s23 = smov (%p41_p0, %s39_s23), 0  ;;  %p62_p5 = scmp.eq.s32.totalorder %s948_s21, 0 }
  0x12   : > { %1261 = sst [smem:[#allocation17_spill]] %s1289_s23  ;;  %p960_p4 = por %p56_p2, %p55_p1 }
  0x13   : > { %s43_s26 = ssub.s32 %s878_s19, %s1289_s23  ;;  %p141_p6 = scmp.eq.s32.totalorder %s948_s21, 1 }
  0x14   : > { %p46_p7 = scmp.eq.s32.totalorder %s43_s26, 0  ;;  %p968_p8 = por %p62_p5, %p61_p3 }
  0x15   : > { %p972_p9 = por %p141_p6, %p55_p1  ;;  %p147_p10 = scmp.eq.s32.totalorder %s576_s22, 1 }
  0x16   : > { %s1263_s27 = scalar_select %p968_p8, 1, 0 }
  0x17   : > { %s1264_s28 = scalar_select %p972_p9, 1, 0 }
  0x18   : > { %s977_s29 = scalar_select %p46_p7, %s870_s17, %s48_s24  }
  0x19   : > { %p979_p11 = por %p147_p10, %p61_p3  ;;  %p621_p13 = scmp.lt.s32.totalorder %s882_s20, 2 }
  0x1a   : > { %1265 = sst [smem:[#allocation18_spill]] %s977_s29  ;;  %s1247_s5 = sand.u32 1, %s870_s17  }
  0x1b   : > { %s1266_s30 = scalar_select %p979_p11, 1, 0 }
  0x1c   : > { %s988_s6 = smul.u32 40, %s1247_s5  ;;  %p995_p0 = pnand %p621_p13, %p960_p4 }
  0x1d   : > { %s991_s7 = smul.u32 640, %s878_s19  ;;  %s216_s9 = sand.u32 1, %s882_s20  }
  0x1e   : > { %s1268_s1 = sld [smem:[#allocation19_spill]]  ;;  %s220_s13 = scalar_lea.vmem [#allocation5], %s988_s6 }
  0x1f   : > { %s229_s14 = sshll.u32 %s220_s13, 4  ;;  %s1011_s22 = scalar_lea.sflag [#allocation6], %s216_s9  ;;  %s1008_s14 = int_to_ptr.vmem [resolvable:$true] %s229_s14 }
  0x20   : > { %p1017_p4 = pneg %p995_p0 }
  0x24   : > { %s1004_s12 = scalar_lea.hbm %s1268_s1, %s991_s7  ;;  %s679_s11 = scalar_lea.hbm %s1268_s1, 1280 }
  0x25   : > { %s674_s24 = scalar_lea.hbm %s1004_s12, 640  ;;  %p680_p7 = scmp.lt.u32.totalorder %s1004_s12, %s1268_s1 }
  0x26   : > { %p675_p3 = scmp.ne.s32.totalorder %s1004_s12, %s674_s24  ;;  %p681_p10 = scmp.lt.u32.totalorder %s679_s11, %s674_s24 }
  0x27   : > { %p683_p12 = scmp.lt.u32.totalorder %s674_s24, %s1004_s12 }
  0x28   : > { %p677_p5 = pnand %p1017_p4, %p675_p3  ;;  %p682_p13 = por %p681_p10, %p680_p7 }
  0x2a   : > { %p678_p6 = pneg %p677_p5  ;;  %p684_p1 = por %p683_p12, %p682_p13 }
  0x2c   : > { %p685_p2 = pnand %p684_p1, %p678_p6 }
  0x2e   : > { %688 = shalt.err (!%p685_p2)
}
  0x2f   : > { %s689_s9 = scalar_lea.vmem %s1008_s14, 640  ;;  %s884_s26 = smov [#allocation5]  }
  0x30   : > { %p690_p3 = scmp.ne.s32.totalorder %s1008_s14, %s689_s9  ;;  %s694_s10 = sshll.u32 %s884_s26, 4  ;;  %s695_s10 = int_to_ptr.vmem [resolvable:$false] %s694_s10 }
  0x31   : > { %s696_s5 = scalar_lea.vmem %s695_s10, 1280  ;;  %p697_p9 = scmp.lt.s32.totalorder %s1008_s14, %s695_s10 }
  0x32   : > { %p692_p5 = pnand %p690_p3, %p1017_p4  ;;  %p698_p8 = scmp.lt.s32.totalorder %s696_s5, %s689_s9 }
  0x34   : > { %p693_p11 = pneg %p692_p5  ;;  %p699_p7 = por %p698_p8, %p697_p9 }
  0x36   : > { %p700_p10 = pnand %p699_p7, %p693_p11 }
  0x38   : > { %703 = shalt.err (!%p700_p10)
}
  0x39   : > { %s1250_s24 = smov 128   ;;  %s1252_s11 = smov 8  }
  0x3a   : > { %610 = dma.hbm_to_vmem [thread:$0]  (!%p995_p0), %s1004_s12, 640, %s1008_s14, %s1011_s22, %s1250_s24, %s1250_s24, %s1252_s11  }
  0x3b   : > { %p1270_p8 = scmp.lt.s32.totalorder %s882_s20, 3  ;;  %p1271_p9 = scmp.ge.s32.totalorder %s882_s20, 1 }
  0x3c   : > { %s1056_s10 = scalar_lea.hbm %s1242_s0, %s991_s7  ;;  %s197_s5 = scalar_lea.vmem [#allocation2], %s988_s6 }
  0x3d   : > { %p1048_p11 = pnand %p1271_p9, %p1270_p8  ;;  %s206_s1 = sshll.u32 %s197_s5, 4  ;;  %s1059_s1 = int_to_ptr.vmem [resolvable:$true] %s206_s1 }
  0x3e   : > { %s1065_s24 = scalar_lea.hbm %s1244_s2, %s991_s7  ;;  %s1273_s11 = sand.u32 1, %s870_s17  }
  0x3f   : > { %s1272_s13 = scalar_select %p1048_p11, 1, 0 }
  0x40   : > { %s1069_s23 = scalar_lea.sflag [#allocation3], %s1273_s11  ;;  %s704_s19 = scalar_lea.hbm %s1056_s10, 640 }
  0x41   : > { %p705_p12 = scmp.ne.s32.totalorder %s1056_s10, %s704_s19  ;;  %s709_s29 = scalar_lea.hbm %s1242_s0, 1280 }
  0x42   : > { %p710_p6 = scmp.lt.u32.totalorder %s1056_s10, %s1242_s0  ;;  %p711_p13 = scmp.lt.u32.totalorder %s709_s29, %s704_s19 }
  0x43   : > { %p707_p1 = pnand %p705_p12, %p1017_p4  ;;  %p713_p5 = scmp.lt.u32.totalorder %s704_s19, %s1056_s10 }
  0x44   : > { %p712_p3 = por %p711_p13, %p710_p6 }
  0x45   : > { %p708_p2 = pneg %p707_p1 }
  0x46   : > { %p714_p7 = por %p713_p5, %p712_p3 }
  0x48   : > { %p715_p10 = pnand %p714_p7, %p708_p2 }
  0x4a   : > { %718 = shalt.err (!%p715_p10)
}
  0x4b   : > { %s719_s7 = scalar_lea.vmem %s1059_s1, 640  ;;  %s887_s11 = smov [#allocation2]  }
  0x4c   : > { %p720_p8 = scmp.ne.s32.totalorder %s1059_s1, %s719_s7  ;;  %s724_s12 = sshll.u32 %s887_s11, 4  ;;  %s725_s12 = int_to_ptr.vmem [resolvable:$false] %s724_s12 }
  0x4d   : > { %s726_s20 = scalar_lea.vmem %s725_s12, 1280  ;;  %p727_p1 = scmp.lt.s32.totalorder %s1059_s1, %s725_s12 }
  0x4e   : > { %p722_p9 = pnand %p720_p8, %p1017_p4  ;;  %p728_p11 = scmp.lt.s32.totalorder %s726_s20, %s719_s7 }
  0x50   : > { %p723_p12 = pneg %p722_p9  ;;  %p729_p6 = por %p728_p11, %p727_p1 }
  0x52   : > { %p730_p13 = pnand %p729_p6, %p723_p12 }
  0x54   : > { %733 = shalt.err (!%p730_p13)
}
  0x55   : > { %s1274_s19 = smov 8   ;;  %s1275_s29 = smov 128  }
  0x56   : > { %607 = dma.hbm_to_vmem [thread:$0]  (!%p995_p0), %s1056_s10, 640, %s1059_s1, %s1069_s23, %s1275_s29, %s1275_s29, %s1274_s19  }
  0x57   : > { %s243_s14 = scalar_lea.vmem [#allocation7], %s988_s6  ;;  %s734_s26 = scalar_lea.hbm %s1065_s24, 640 }
  0x58   : > { %s252_s9 = sshll.u32 %s243_s14, 4  ;;  %p735_p11 = scmp.ne.s32.totalorder %s1065_s24, %s734_s26  ;;  %s1097_s9 = int_to_ptr.vmem [resolvable:$true] %s252_s9 }
  0x59   : > { %s739_s11 = scalar_lea.hbm %s1244_s2, 1280  ;;  %p740_p5 = scmp.lt.u32.totalorder %s1065_s24, %s1244_s2 }
  0x5a   : > { %p737_p2 = pnand %p735_p11, %p1017_p4  ;;  %p741_p7 = scmp.lt.u32.totalorder %s739_s11, %s734_s26 }
  0x5b   : > { %p743_p8 = scmp.lt.u32.totalorder %s734_s26, %s1065_s24 }
  0x5c   : > { %p738_p3 = pneg %p737_p2  ;;  %p742_p10 = por %p741_p7, %p740_p5 }
  0x5e   : > { %p744_p9 = por %p743_p8, %p742_p10 }
  0x60   : > { %p745_p12 = pnand %p744_p9, %p738_p3 }
  0x62   : > { %748 = shalt.err (!%p745_p12)
}
  0x63   : > { %s749_s1 = scalar_lea.vmem %s1097_s9, 640  ;;  %s888_s23 = smov [#allocation7]  }
  0x64   : > { %p750_p1 = scmp.ne.s32.totalorder %s1097_s9, %s749_s1  ;;  %s754_s6 = sshll.u32 %s888_s23, 4  ;;  %s755_s6 = int_to_ptr.vmem [resolvable:$false] %s754_s6 }
  0x65   : > { %s756_s10 = scalar_lea.vmem %s755_s6, 1280  ;;  %p757_p11 = scmp.lt.s32.totalorder %s1097_s9, %s755_s6 }
  0x66   : > { %p752_p6 = pnand %p750_p1, %p1017_p4  ;;  %p758_p2 = scmp.lt.s32.totalorder %s756_s10, %s749_s1 }
  0x68   : > { %p753_p13 = pneg %p752_p6  ;;  %p759_p5 = por %p758_p2, %p757_p11 }
  0x6a   : > { %p760_p7 = pnand %p759_p5, %p753_p13 }
  0x6c   : > { %763 = shalt.err (!%p760_p7)
}
  0x6d   : > { %613 = dma.hbm_to_vmem [thread:$0]  (!%p995_p0), %s1065_s24, 640, %s1097_s9, %s1011_s22, %s1275_s29, %s1275_s29, %s1274_s19  }
  0x6e   : > { %p1276_p4 = scmp.ne.s32.totalorder %s1272_s13, 0 }
  0x6f   : > { %s1127_s25 = sand.u32 (!%p1276_p4), 1, %s866_s16   ;;  %p1277_p3 = scmp.ne.s32.totalorder (!%p1276_p4), %s1263_s27, 0 }
  0x70   : > { %264 = sbr.rel (%p1276_p4) target bundleno = 187 (0xbb), region = 32  ;;  %s267_s26 = scalar_lea.sflag (!%p1276_p4), [#allocation3], %s1127_s25 }
  0x71   : > { %s593_s14 = smul.u32 (!%p1276_p4), 40, %s1127_s25 }
  0x73   : > { %s270_s5 = scalar_lea.vmem (!%p1276_p4), [#allocation2], %s593_s14 }
  0x77   : > { %845 = dma.done.wait (%p1277_p3), %s267_s26, 640  }
  0x78   : > { %847 = vsyncadd (%p1277_p3), %s267_s26, 4294966656  ;;  %s275_s8 = sand.u32 1, %s948_s21   ;;  %s279_s24 = scalar_lea.vmem [#allocation5], %s593_s14 }
  0x79   : > { %s276_s22 = scalar_lea.sflag [#allocation6], %s275_s8 }
  0x7a   : > { %849 = dma.done.wait (%p1277_p3), %s276_s22, 1280  }
  0x7b   : > { %851 = vsyncadd (%p1277_p3), %s276_s22, 4294966016  ;;  %s1141_s13 = scalar_lea.vmem [#allocation8], %s1127_s25  ;;  %v889_v0 = vmov 0.0   ;;  %s1145_s19 = scalar_lea.vmem [#allocation9], %s1127_s25  ;;  %v335_v1 = vld [vmem:[%s270_s5] sm:$0xff]  ;;  %v336_v2 = vld [vmem:[%s270_s5 + $0x8] sm:$0xff] }
  0x7c   : > { %333 = vst [vmem:[%s1141_s13] sm:$0x1] %v889_v0  ;;  %334 = vst [vmem:[%s1145_s19] sm:$0x1] %v889_v0  ;;  %v337_v3 = vld [vmem:[%s270_s5 + $0x10] sm:$0xff]  ;;  %v338_v4 = vld [vmem:[%s270_s5 + $0x18] sm:$0xff]  ;;  %s288_s21 = scalar_lea.vmem [#allocation7], %s593_s14  ;;  %s583_s27 = sshll.u32 %s874_s18, 4 }
  0x7d   : > { %v339_v5 = vld [vmem:[%s270_s5 + $0x20] sm:$0xff]  ;;  %v340_v6 = vld [vmem:[%s279_s24] sm:$0xff]  ;;  %v341_v7 = vld [vmem:[%s279_s24 + $0x8] sm:$0xff]  ;;  %s421_s29 = sshll.u32 %s1145_s19, 4  ;;  %s1156_s11 = scalar_lea.hbm %s1246_s4, %s583_s27  ;;  %s1158_s29 = int_to_ptr.vmem [resolvable:$true] %s421_s29 }
  0x7e   : > { %v342_v8 = vld [vmem:[%s279_s24 + $0x10] sm:$0xff]  ;;  %v343_v9 = vld [vmem:[%s279_s24 + $0x18] sm:$0xff]  ;;  %v350_v10 = vsub.f32 %v335_v1, %v340_v6  ;;  %v344_v11 = vld [vmem:[%s279_s24 + $0x20] sm:$0xff]  ;;  %v351_v14 = vsub.f32 %v336_v2, %v341_v7  ;;  %s408_s12 = sshll.u32 %s1141_s13, 4  ;;  %s396_s20 = scalar_lea.sflag [#allocation10], %s1127_s25  ;;  %s1194_s12 = int_to_ptr.vmem [resolvable:$true] %s408_s12 }
  0x7f   : > { %v345_v12 = vld [vmem:[%s288_s21] sm:$0xff]  ;;  %v346_v13 = vld [vmem:[%s288_s21 + $0x8] sm:$0xff]  ;;  %v352_v15 = vsub.f32 %v337_v3, %v342_v8  ;;  %v353_v16 = vsub.f32 %v338_v4, %v343_v9  ;;  %v347_v17 = vld [vmem:[%s288_s21 + $0x10] sm:$0xff]  ;;  %v354_v20 = vsub.f32 %v339_v5, %v344_v11  ;;  %s764_s1 = scalar_lea.vmem %s1158_s29, 16  ;;  %p1278_p10 = scmp.ne.s32.totalorder %s1264_s28, 0 }
  0x80   : > { %v348_v18 = vld [vmem:[%s288_s21 + $0x18] sm:$0xff]  ;;  %v349_v19 = vld [vmem:[%s288_s21 + $0x20] sm:$0xff]  ;;  %v356_v21 = vmul.f32 %v350_v10, %v345_v12  ;;  %v379_v22 = vadd.f32 %v346_v13, %v345_v12  ;;  %v357_v23 = vmul.f32 %v351_v14, %v346_v13  ;;  %p765_p0 = scmp.ne.s32.totalorder %s1158_s29, %s764_s1  ;;  %s890_s23 = smov [#allocation9]  }
  0x81   : > { %v358_v24 = vmul.f32 %v352_v15, %v347_v17  ;;  %v359_v25 = vmul.f32 %v353_v16, %v348_v18  ;;  %v360_v28 = vmul.f32 %v354_v20, %v349_v19  ;;  %s768_s6 = sshll.u32 %s890_s23, 4  ;;  %s769_s6 = int_to_ptr.vmem [resolvable:$false] %s768_s6 }
  0x82   : > { %v361_v26 = vmul.f32 %v356_v21, %v350_v10  ;;  %v380_v27 = vadd.f32 %v379_v22, %v347_v17  ;;  %v362_v29 = vmul.f32 %v357_v23, %v351_v14  ;;  %p766_p8 = pnand %p765_p0, %p1278_p10  ;;  %s770_s10 = scalar_lea.vmem %s769_s6, 32 }
  0x83   : > { %v363_v30 = vmul.f32 %v358_v24, %v352_v15  ;;  %v364_v32 = vmul.f32 %v359_v25, %v353_v16  ;;  %v365_v35 = vmul.f32 %v360_v28, %v354_v20  ;;  %v378_v47 = vld [vmem:[%s1145_s19] sm:$0x1]  ;;  %p771_p12 = scmp.lt.s32.totalorder %s1158_s29, %s769_s6  ;;  %p772_p1 = scmp.lt.s32.totalorder %s770_s10, %s764_s1 }
  0x84   : > { %v381_v31 = vadd.f32 %v380_v27, %v348_v18  ;;  %v366_v33 = vadd.f32 %v362_v29, %v361_v26  ;;  %v355_v52 = vld [vmem:[%s1141_s13] sm:$0x1]  ;;  %p767_p9 = pneg %p766_p8 }
  0x85   : > { %p773_p6 = por %p772_p1, %p771_p12 }
  0x86   : > { %v382_v34 = vadd.f32 %v381_v31, %v349_v19  ;;  %v367_v36 = vadd.f32 %v366_v33, %v363_v30 }
  0x87   : > { %p774_p13 = pnand %p773_p6, %p767_p9 }
  0x88   : > { %v383_v37 = vrot.slane %v382_v34, 4  ;;  %v368_v38 = vadd.f32 %v367_v36, %v364_v32 }
  0x8a   : > { %v384_v39 = vadd.f32 %v383_v37, %v382_v34  ;;  %v369_v40 = vadd.f32 %v368_v38, %v365_v35 }
  0x8c   : > { %v385_v41 = vrot.slane %v384_v39, 2  ;;  %v370_v42 = vrot.slane %v369_v40, 4 }
  0x8e   : > { %v386_v43 = vadd.f32 %v385_v41, %v384_v39  ;;  %v371_v44 = vadd.f32 %v370_v42, %v369_v40 }
  0x90   : > { %v387_v45 = vrot.slane %v386_v43, 1  ;;  %v372_v46 = vrot.slane %v371_v44, 2 }
  0x92   : > { %v388_v48 = vadd.f32 %v387_v45, %v386_v43  ;;  %v373_v49 = vadd.f32 %v372_v46, %v371_v44 }
  0x94   : > { %v389_v50 = vadd.f32 %v388_v48, %v378_v47  ;;  %v374_v51 = vrot.slane %v373_v49, 1 }
  0x96   : > { %390 = vst [vmem:[%s1145_s19] sm:$0x1] %v389_v50  ;;  %v375_v53 = vadd.f32 %v374_v51, %v373_v49 }
  0x97   : > { %777 = shalt.err (!%p774_p13)
}
  0x98   : > { %s778_s14 = scalar_lea.hbm %s1156_s11, 16  ;;  %s782_s8 = scalar_lea.hbm %s1246_s4, 32 }
  0x99   : > { %p779_p11 = scmp.ne.s32.totalorder %s1156_s11, %s778_s14  ;;  %p783_p7 = scmp.lt.u32.totalorder %s1156_s11, %s1246_s4 }
  0x9a   : > { %p784_p4 = scmp.lt.u32.totalorder %s782_s8, %s778_s14  ;;  %p786_p0 = scmp.lt.u32.totalorder %s778_s14, %s1156_s11 }
  0x9b   : > { %p780_p2 = pnand %p779_p11, %p1278_p10 }
  0x9c   : > { %p785_p3 = por %p784_p4, %p783_p7 }
  0x9d   : > { %p781_p5 = pneg %p780_p2 }
  0x9e   : > { %p787_p8 = por %p786_p0, %p785_p3 }
  0xa0   : > { %p788_p9 = pnand %p787_p8, %p781_p5 }
  0xa2   : > { %791 = shalt.err (!%p788_p9)
}
  0xa3   : > { %601 = dma.vmem_to_hbm [thread:$0]  (%p1278_p10), %s1158_s29, 16, %s1156_s11, %s396_s20   ;;  %v376_v54 = vadd.f32 %v375_v53, %v355_v52 }
  0xa4   : > { %s1190_s9 = scalar_lea.hbm %s1245_s3, %s583_s27  ;;  %s392_s7 = scalar_lea.sflag [#allocation4], %s1127_s25 }
  0xa5   : > { %377 = vst [vmem:[%s1141_s13] sm:$0x1] %v376_v54  ;;  %s792_s1 = scalar_lea.vmem %s1194_s12, 16  ;;  %s891_s29 = smov [#allocation8]  }
  0xa6   : > { %p793_p12 = scmp.ne.s32.totalorder %s1194_s12, %s792_s1  ;;  %s796_s18 = sshll.u32 %s891_s29, 4  ;;  %s797_s18 = int_to_ptr.vmem [resolvable:$false] %s796_s18 }
  0xa7   : > { %s798_s11 = scalar_lea.vmem %s797_s18, 32  ;;  %p799_p13 = scmp.lt.s32.totalorder %s1194_s12, %s797_s18 }
  0xa8   : > { %p794_p1 = pnand %p793_p12, %p1278_p10  ;;  %p800_p11 = scmp.lt.s32.totalorder %s798_s11, %s792_s1 }
  0xaa   : > { %p795_p6 = pneg %p794_p1  ;;  %p801_p2 = por %p800_p11, %p799_p13 }
  0xac   : > { %p802_p5 = pnand %p801_p2, %p795_p6 }
  0xae   : > { %805 = shalt.err (!%p802_p5)
}
  0xaf   : > { %s806_s25 = scalar_lea.hbm %s1190_s9, 16  ;;  %s810_s20 = scalar_lea.hbm %s1245_s3, 32 }
  0xb0   : > { %p807_p7 = scmp.ne.s32.totalorder %s1190_s9, %s806_s25  ;;  %p811_p0 = scmp.lt.u32.totalorder %s1190_s9, %s1245_s3 }
  0xb1   : > { %p812_p8 = scmp.lt.u32.totalorder %s810_s20, %s806_s25  ;;  %p814_p12 = scmp.lt.u32.totalorder %s806_s25, %s1190_s9 }
  0xb2   : > { %p808_p4 = pnand %p807_p7, %p1278_p10 }
  0xb3   : > { %p813_p9 = por %p812_p8, %p811_p0 }
  0xb4   : > { %p809_p3 = pneg %p808_p4 }
  0xb5   : > { %p815_p1 = por %p814_p12, %p813_p9 }
  0xb7   : > { %p816_p6 = pnand %p815_p1, %p809_p3 }
  0xb9   : > { %819 = shalt.err (!%p816_p6)
}
  0xba   : > { %600 = dma.vmem_to_hbm [thread:$0]  (%p1278_p10), %s1194_s12, 16, %s1190_s9, %s392_s7  }
  0xbb PF: > { %s1279_s10 = sld [smem:[#allocation16_spill]]  ;;  %s433_s14 = sand.u32 1, %s862_s15  }
  0xbc   : > { %p1280_p13 = scmp.ne.s32.totalorder %s1266_s30, 0  ;;  %s434_s26 = scalar_lea.sflag [#allocation4], %s433_s14 }
  0xc1   : > { %p1281_p11 = scmp.ge.s32.totalorder %s1279_s10, 2 }
  0xc3   : > { %p615_p2 = pnand %p1281_p11, %p1280_p13 }
  0xc5   : > { %853 = dma.done.wait (!%p615_p2), %s434_s26, 16  }
  0xc6   : > { %855 = vsyncadd (!%p615_p2), %s434_s26, 4294967280  ;;  %s442_s5 = scalar_lea.sflag [#allocation10], %s433_s14 }
  0xc7   : > { %857 = dma.done.wait (!%p615_p2), %s442_s5, 16  }
  0xc8   : > { %859 = vsyncadd (!%p615_p2), %s442_s5, 4294967280  ;;  %s27_s20 = sadd.s32 1, %s1279_s10   ;;  %s1282_s28 = sld [smem:[#allocation18_spill]] }
  0xc9   : > { %p24_p5 = scmp.ge.s32.totalorder %s27_s20, 4   ;;  %s1283_s18 = sld [smem:[#allocation15_spill]] }
  0xca   : > { %s1284_s19 = sld [smem:[#allocation17_spill]]  ;;  %s1285_s15 = smov %s866_s16 }
  0xcb   : > { %s1286_s16 = smov %s870_s17  ;;  %26 = sbr.rel (!%p24_p5) target bundleno = 12 (0xc), region = 122 }
  0xce   : > { %s1287_s17 = smov %s1282_s28 }
  0xd2   :  { %446 = vsyncpa [#allocation3], 1 }
  0xd3   :  { %448 = vsyncpa [#allocation3 + $0x1], 1 }
  0xd4   :  { %449 = vsyncpa [#allocation6], 1 }
  0xd5   :  { %451 = vsyncpa [#allocation6 + $0x1], 1 }
  0xd6   :  { %452 = vsyncpa [#allocation4], 1 }
  0xd7   :  { %454 = vsyncpa [#allocation4 + $0x1], 1 }
  0xd8   :  { %455 = vsyncpa [#allocation10], 1 }
  0xd9   :  { %457 = vsyncpa [#allocation10 + $0x1], 1 }

</bundles_post_ra>
